<compile_context>
chip_gen: v6e
topology: v6e:2x2x1
jax: 0.10.0
libtpu: 0.0.40
codegen_flags: <defaults>
</compile_context>

<pallas_src>
import functools
import math

import jax
import jax.numpy as jnp
from jax.experimental import pallas as pl
from jax.experimental.pallas import tpu as pltpu

LANE = 128


# ------------------------------- kernel --------------------------------------

def _fused_mlp_kernel(*refs, num_layers, relu_flags):
    """Whole MLP on VMEM-resident tiles: one launch, no HBM round-trips for
    intermediate activations.

    refs = (x_ref, w0_ref, b0_ref, w1_ref, b1_ref, ..., o_ref)
    All layer widths are pre-padded to multiples of 128 lanes, so every dot,
    bias add, ReLU and the final store are full-lane (unmasked) ops.
    """
    x_ref = refs[0]
    o_ref = refs[-1]
    h = x_ref[...]
    for i in range(num_layers):
        w_ref = refs[1 + 2 * i]
        b_ref = refs[2 + 2 * i]
        h = jnp.dot(h, w_ref[...], preferred_element_type=jnp.float32)
        h = h + b_ref[...]                       # (1, dout_p) broadcast over rows
        if relu_flags[i]:
            h = jnp.maximum(h, 0.0)
    o_ref[...] = h.astype(o_ref.dtype)


# ------------------------------ tiling ---------------------------------------

def _batch_tile(batch):
    """Largest batch tile (multiple of 8) that divides the batch, capped at
    batch//2 (when batch >= 16) so the grid has >= 2 steps and the "parallel"
    batch axis can shard across v7x's two TensorCores."""
    cap = batch
    if batch >= 16:
        cap = max(8, (batch // 2) // 8 * 8)
    for tb in (8192, 4096, 2048, 1024, 512, 256, 128, 64, 32, 16, 8):
        if tb <= cap and batch % tb == 0:
            return tb
    return batch  # block == full array dim is always legal


def fused_mlp(x, weights, biases, relu_flags):
    """x: (B, din); weights[i]: (in_i_padded, out_i_padded); biases[i]: (1, out_i_padded).

    Returns the lane-padded output (B, out_padded); trailing padded columns
    are exact zeros.
    """
    B, din = x.shape
    dout_p = weights[-1].shape[1]
    tb = _batch_tile(B)
    grid = (B // tb,) if B % tb == 0 else (1,)

    in_specs = [pl.BlockSpec((tb, din), lambda i: (i, 0))]
    flat_params = []
    for w, b in zip(weights, biases):
        # Constant block index -> weights/biases stay VMEM-resident across
        # batch tiles (no re-DMA per grid step).
        in_specs.append(pl.BlockSpec(w.shape, lambda i: (0, 0)))
        in_specs.append(pl.BlockSpec(b.shape, lambda i: (0, 0)))
        flat_params += [w, b]

    # Only override the scoped VMEM limit if the (double-buffered) I/O tiles
    # would outgrow the default limit (16 MiB v5e / 32 MiB v6e+v7x).
    param_bytes = sum(p.size * p.dtype.itemsize for p in flat_params) * 2
    io_bytes = 2 * tb * din * 4 + 2 * tb * dout_p * 4
    need = param_bytes + io_bytes
    vmem_limit = int(min(need * 1.5, 100 << 20)) if need > (24 << 20) else None

    kernel = functools.partial(
        _fused_mlp_kernel, num_layers=len(weights), relu_flags=tuple(relu_flags)
    )
    return pl.pallas_call(
        kernel,
        out_shape=jax.ShapeDtypeStruct((B, dout_p), jnp.float32),
        grid=grid,
        in_specs=in_specs,
        out_specs=pl.BlockSpec((tb, dout_p), lambda i: (i, 0)),
        compiler_params=pltpu.CompilerParams(
            dimension_semantics=("parallel",),    # batch axis shards across TCs (v7x)
            vmem_limit_bytes=vmem_limit,
        ),
    )(x, *flat_params)


def simple_nn_forward(x, weights, biases, relu_flags):
    """SimpleNN forward.  Returns the lane-padded (B, 128k) output whose
    trailing columns are exact zeros; the consumer slices / fuses
    [:, :out_features] itself (keeps the extra HBM pass out of the forward)."""
    return fused_mlp(x, weights, biases, relu_flags)


# ----------------------------- parameters ------------------------------------

def xavier_uniform(key, out_features, in_features):
    # torch.nn.init.xavier_uniform_ on a (out, in) weight matrix.
    bound = math.sqrt(6.0 / (in_features + out_features))
    return jax.random.uniform(
        key, (out_features, in_features), jnp.float32, -bound, bound
    )


def make_torch_params(key, layer_dims):
    """Torch-convention params: weight (out, in) xavier_uniform, bias
    U(-1/sqrt(fan_in), 1/sqrt(fan_in)) as in nn.Linear defaults."""
    params = []
    for din, dout in zip(layer_dims[:-1], layer_dims[1:]):
        key, kw, kb = jax.random.split(key, 3)
        w = xavier_uniform(kw, dout, din)
        bb = 1.0 / math.sqrt(din)
        b = jax.random.uniform(kb, (dout,), jnp.float32, -bb, bb)
        params.append((w, b))
    return params


def make_kernel_params(torch_params):
    """One-time (hoisted) prep for the kernel:
      * transpose weights to (in, out) so the kernel does x @ W directly;
      * zero-pad EVERY layer's output dim to a multiple of 128 lanes, and the
        next layer's input rows to match, so all intermediate activations and
        the final store are lane-dense (unmasked vregs / native MXU tiles).
    Zero weight cols + zero bias + ReLU(0)=0 + zero input rows of the next
    layer reproduce nn.Linear exactly; padded output columns are exact zeros.
    """
    weights, biases = [], []
    prev_out_padded = None
    for w, b in torch_params:
        w_t = jnp.transpose(w)                    # (in, out)
        b2 = b.reshape(1, -1)
        # Match this layer's input rows to the previous layer's padded output.
        if prev_out_padded is not None and prev_out_padded > w_t.shape[0]:
            w_t = jnp.pad(w_t, ((0, prev_out_padded - w_t.shape[0]), (0, 0)))
        # Pad this layer's output columns (and bias) to a multiple of 128.
        pad = (-w_t.shape[1]) % LANE
        if pad:
            w_t = jnp.pad(w_t, ((0, 0), (0, pad)))
            b2 = jnp.pad(b2, ((0, 0), (0, pad)))
        prev_out_padded = w_t.shape[1]
        weights.append(w_t)
        biases.append(b2)
    return weights, biases


# --------------------------------- demo ---------------------------------------

if __name__ == "__main__":
    key = jax.random.PRNGKey(0)
    k_x, k_p = jax.random.split(key)

    # Architecture: 32 -> 64 -> 64 -> 16 (ReLU between Linear layers).
    layer_dims = [32, 64, 64, 16]
    batch = 16   # >= 16 so the batch grid has 2 steps (v7x megacore sharding)

    x = jax.random.normal(k_x, (batch, layer_dims[0]), jnp.float32)
    torch_params = make_torch_params(k_p, layer_dims)
    weights, biases = make_kernel_params(torch_params)
    relu_flags = tuple(i < len(torch_params) - 1 for i in range(len(torch_params)))

    fwd = jax.jit(functools.partial(simple_nn_forward, relu_flags=relu_flags))
    out_padded = jax.block_until_ready(fwd(x, weights, biases))

    # Consumer-side view of the true output (padded lanes are exact zeros).
    out = out_padded[:, :layer_dims[-1]]

    # Pure-JAX reference of the same forward pass (torch-convention params).
    ref = x
    for i, (w, b) in enumerate(torch_params):
        ref = ref @ w.T + b
        if i < len(torch_params) - 1:
            ref = jnp.maximum(ref, 0.0)

    assert out_padded.shape == (batch, LANE)
    assert out.shape == (batch, layer_dims[-1])
    assert bool(jnp.all(out_padded[:, layer_dims[-1]:] == 0.0))
    assert jnp.allclose(out, ref, atol=1e-5, rtol=1e-5)

    print("KERNEL_OK")
</pallas_src>

<mosaic_0001>
module attributes {stable_mosaic.version = 11 : i64} {
  func.func @_fused_mlp_kernel(%arg0: i32, %arg1: memref<8x32xf32, #tpu.memory_space<vmem>>, %arg2: memref<32x128xf32, #tpu.memory_space<vmem>>, %arg3: memref<1x128xf32, #tpu.memory_space<vmem>>, %arg4: memref<128x128xf32, #tpu.memory_space<vmem>>, %arg5: memref<1x128xf32, #tpu.memory_space<vmem>>, %arg6: memref<128x128xf32, #tpu.memory_space<vmem>>, %arg7: memref<1x128xf32, #tpu.memory_space<vmem>>, %arg8: memref<8x128xf32, #tpu.memory_space<vmem>>) attributes {dimension_semantics = [#tpu.dimension_semantics<parallel>], iteration_bounds = array<i64: 2>, scalar_prefetch = 0 : i64, scratch_operands = 0 : i64, tpu.core_type = #tpu.core_type<tc>, window_params = [{transform_indices = @transform_0, window_bounds = array<i64: 8, 32>}, {pipeline_mode = #tpu.pipeline_mode<synchronous>, transform_indices = @transform_1, window_bounds = array<i64: 32, 128>}, {pipeline_mode = #tpu.pipeline_mode<synchronous>, transform_indices = @transform_2, window_bounds = array<i64: 1, 128>}, {pipeline_mode = #tpu.pipeline_mode<synchronous>, transform_indices = @transform_3, window_bounds = array<i64: 128, 128>}, {pipeline_mode = #tpu.pipeline_mode<synchronous>, transform_indices = @transform_4, window_bounds = array<i64: 1, 128>}, {pipeline_mode = #tpu.pipeline_mode<synchronous>, transform_indices = @transform_5, window_bounds = array<i64: 128, 128>}, {pipeline_mode = #tpu.pipeline_mode<synchronous>, transform_indices = @transform_6, window_bounds = array<i64: 1, 128>}, {transform_indices = @transform_7, window_bounds = array<i64: 8, 128>}]} {
    %c0 = arith.constant 0 : index
    %c0_0 = arith.constant 0 : index
    %0 = vector.load %arg1[%c0, %c0_0] : memref<8x32xf32, #tpu.memory_space<vmem>>, vector<8x32xf32>
    %c0_1 = arith.constant 0 : index
    %c0_2 = arith.constant 0 : index
    %1 = vector.load %arg2[%c0_1, %c0_2] : memref<32x128xf32, #tpu.memory_space<vmem>>, vector<32x128xf32>
    %cst = arith.constant dense<0.000000e+00> : vector<8x128xf32>
    %2 = tpu.matmul %0, %1, %cst {dimension_numbers = #tpu.dot_dimension_numbers<[1], [0], [0], [1], [0, 0, 1, 1], [], []>} : vector<8x32xf32>, vector<32x128xf32>, vector<8x128xf32> -> vector<8x128xf32>
    %c0_3 = arith.constant 0 : index
    %c0_4 = arith.constant 0 : index
    %3 = vector.load %arg3[%c0_3, %c0_4] : memref<1x128xf32, #tpu.memory_space<vmem>>, vector<1x128xf32>
    %4 = vector.broadcast %3 : vector<1x128xf32> to vector<8x128xf32>
    %5 = arith.addf %2, %4 : vector<8x128xf32>
    %cst_5 = arith.constant 0.000000e+00 : f32
    %6 = vector.broadcast %cst_5 : f32 to vector<8x128xf32>
    %7 = arith.maximumf %5, %6 : vector<8x128xf32>
    %c0_6 = arith.constant 0 : index
    %c0_7 = arith.constant 0 : index
    %8 = vector.load %arg4[%c0_6, %c0_7] : memref<128x128xf32, #tpu.memory_space<vmem>>, vector<128x128xf32>
    %cst_8 = arith.constant dense<0.000000e+00> : vector<8x128xf32>
    %9 = tpu.matmul %7, %8, %cst_8 {dimension_numbers = #tpu.dot_dimension_numbers<[1], [0], [0], [1], [0, 0, 1, 1], [], []>} : vector<8x128xf32>, vector<128x128xf32>, vector<8x128xf32> -> vector<8x128xf32>
    %c0_9 = arith.constant 0 : index
    %c0_10 = arith.constant 0 : index
    %10 = vector.load %arg5[%c0_9, %c0_10] : memref<1x128xf32, #tpu.memory_space<vmem>>, vector<1x128xf32>
    %11 = vector.broadcast %10 : vector<1x128xf32> to vector<8x128xf32>
    %12 = arith.addf %9, %11 : vector<8x128xf32>
    %cst_11 = arith.constant 0.000000e+00 : f32
    %13 = vector.broadcast %cst_11 : f32 to vector<8x128xf32>
    %14 = arith.maximumf %12, %13 : vector<8x128xf32>
    %c0_12 = arith.constant 0 : index
    %c0_13 = arith.constant 0 : index
    %15 = vector.load %arg6[%c0_12, %c0_13] : memref<128x128xf32, #tpu.memory_space<vmem>>, vector<128x128xf32>
    %cst_14 = arith.constant dense<0.000000e+00> : vector<8x128xf32>
    %16 = tpu.matmul %14, %15, %cst_14 {dimension_numbers = #tpu.dot_dimension_numbers<[1], [0], [0], [1], [0, 0, 1, 1], [], []>} : vector<8x128xf32>, vector<128x128xf32>, vector<8x128xf32> -> vector<8x128xf32>
    %c0_15 = arith.constant 0 : index
    %c0_16 = arith.constant 0 : index
    %17 = vector.load %arg7[%c0_15, %c0_16] : memref<1x128xf32, #tpu.memory_space<vmem>>, vector<1x128xf32>
    %18 = vector.broadcast %17 : vector<1x128xf32> to vector<8x128xf32>
    %19 = arith.addf %16, %18 : vector<8x128xf32>
    %c0_17 = arith.constant 0 : index
    %c0_18 = arith.constant 0 : index
    %20 = vector.load %arg8[%c0_17, %c0_18] : memref<8x128xf32, #tpu.memory_space<vmem>>, vector<8x128xf32>
    tpu.vector_store %arg8[%c0_17, %c0_18], %19 {strides = array<i32>} : memref<8x128xf32, #tpu.memory_space<vmem>>, vector<8x128xf32>,
    return
  }
  func.func @transform_0(%arg0: i32) -> (i32, i32) {
    %c0_i32 = arith.constant 0 : i32
    %c0_i32_0 = arith.constant 0 : i32
    return %arg0, %c0_i32 : i32, i32
  }
  func.func @transform_1(%arg0: i32) -> (i32, i32) {
    %c0_i32 = arith.constant 0 : i32
    %c0_i32_0 = arith.constant 0 : i32
    %c0_i32_1 = arith.constant 0 : i32
    return %c0_i32, %c0_i32_0 : i32, i32
  }
  func.func @transform_2(%arg0: i32) -> (i32, i32) {
    %c0_i32 = arith.constant 0 : i32
    %c0_i32_0 = arith.constant 0 : i32
    %c0_i32_1 = arith.constant 0 : i32
    return %c0_i32, %c0_i32_0 : i32, i32
  }
  func.func @transform_3(%arg0: i32) -> (i32, i32) {
    %c0_i32 = arith.constant 0 : i32
    %c0_i32_0 = arith.constant 0 : i32
    %c0_i32_1 = arith.constant 0 : i32
    return %c0_i32, %c0_i32_0 : i32, i32
  }
  func.func @transform_4(%arg0: i32) -> (i32, i32) {
    %c0_i32 = arith.constant 0 : i32
    %c0_i32_0 = arith.constant 0 : i32
    %c0_i32_1 = arith.constant 0 : i32
    return %c0_i32, %c0_i32_0 : i32, i32
  }
  func.func @transform_5(%arg0: i32) -> (i32, i32) {
    %c0_i32 = arith.constant 0 : i32
    %c0_i32_0 = arith.constant 0 : i32
    %c0_i32_1 = arith.constant 0 : i32
    return %c0_i32, %c0_i32_0 : i32, i32
  }
  func.func @transform_6(%arg0: i32) -> (i32, i32) {
    %c0_i32 = arith.constant 0 : i32
    %c0_i32_0 = arith.constant 0 : i32
    %c0_i32_1 = arith.constant 0 : i32
    return %c0_i32, %c0_i32_0 : i32, i32
  }
  func.func @transform_7(%arg0: i32) -> (i32, i32) {
    %c0_i32 = arith.constant 0 : i32
    %c0_i32_0 = arith.constant 0 : i32
    return %arg0, %c0_i32 : i32, i32
  }
}

</mosaic_0001>

<bundles_post_ra>
// kernel: simple_nn_forward.1
= control target key start
LH: loop header
LB: loop body
LE: loop exit
PB: predicated region body
PF: predicated region fallthrough
CT: control target
= control target key end

     0   :  { %s1416_s0 = inlined_call_operand.hbm [shape: f32[16,32], index: 0, kind: input, shape index: {}]   ;;  %s1417_s1 = inlined_call_operand.hbm [shape: f32[32,128], index: 1, kind: input, shape index: {}]   ;;  %s1418_s2 = inlined_call_operand.vmem [shape: f32[1,128], index: 2, kind: input, shape index: {}]   ;;  %s1419_s3 = inlined_call_operand.hbm [shape: f32[128,128], index: 3, kind: input, shape index: {}]   ;;  %s1420_s4 = inlined_call_operand.vmem [shape: f32[1,128], index: 4, kind: input, shape index: {}]   ;;  %s1421_s5 = inlined_call_operand.hbm [shape: f32[128,128], index: 5, kind: input, shape index: {}]   ;;  %s1422_s6 = inlined_call_operand.vmem [shape: f32[1,128], index: 6, kind: input, shape index: {}]   ;;  %s1423_s7 = inlined_call_operand.hbm [shape: f32[16,128], index: 7, kind: output, shape index: {}]  }
   0x1   :  { %1428 = sst [smem:[#allocation15_spill]] %s1417_s1 }
   0x2   :  { %1429 = sst [smem:[#allocation16_spill]] %s1419_s3 }
   0x3   :  { %12 = vsyncpa [#allocation3], 0 }
   0x4   :  { %14 = vsyncpa [#allocation3 + $0x1], 0 }
   0x5   :  { %15 = vsyncpa [#allocation6], 0 }
   0x6   :  { %16 = vsyncpa [#allocation9], 0 }
   0x7   :  { %17 = vsyncpa [#allocation4], 0 }
   0x8   :  { %19 = vsyncpa [#allocation4 + $0x1], 0  ;;  %s1178_s24 = smov 0   ;;  %s1180_s25 = smov 0  }
   0x9   :  { %s1182_s26 = smov 0   ;;  %s1184_s27 = smov 0  }
   0xa LB: > { %s1199_s28 = sadd.s32 4294967295, %s1127_s27   ;;  %s726_s29 = sadd.s32 4294967294, %s1127_s27   ;;  %s1127_s27 = sphi %s1184_s27, %s1451_s27   ;;  %s1123_s26 = sphi %s1182_s26, %s1450_s26   ;;  %s1119_s25 = sphi %s1180_s25, %s1449_s25   ;;  %s1115_s24 = sphi %s1178_s24, %s1448_s24  }
   0xb   : > { %p45_p0 = scmp.ne.s32.totalorder %s1119_s25, %s1115_s24  ;;  %p1424_p1 = scmp.eq.s32.totalorder %s1199_s28, 0 }
   0xc   : > { %p201_p3 = scmp.eq.s32.totalorder %s726_s29, 1  ;;  %p727_p5 = scmp.ge.s32.totalorder %s1127_s27, 1 }
   0xd   : > { %p1208_p4 = por %p1424_p1, %p45_p0  ;;  %p208_p7 = scmp.lt.s32.totalorder %s1127_s27, 3 }
   0xe   : > { %p1213_p6 = por %p201_p3, %p45_p0  ;;  %s1129_s10 = smov [#allocation5]  }
   0xf   : > { %s1430_s30 = scalar_select %p1208_p4, 1, 0 }
  0x10   : > { %s1431_s8 = scalar_select %p1213_p6, 1, 0 }
  0x11   : > { %p1218_p8 = pnand %p727_p5, %p208_p7  ;;  %s220_s11 = sshll.u32 %s1129_s10, 4  ;;  %s221_s11 = int_to_ptr.vmem [resolvable:$true] %s220_s11 }
  0x12   : > { %s1130_s13 = smov [#allocation7]   ;;  %s1131_s15 = smov [#allocation8]  }
  0x13   : > { %s1432_s9 = scalar_select %p1218_p8, 1, 0 }
  0x14   : > { %p884_p9 = pneg %p1218_p8  ;;  %s236_s14 = sshll.u32 %s1130_s13, 4  ;;  %s237_s14 = int_to_ptr.vmem [resolvable:$true] %s236_s14 }
  0x15   : > { %s252_s16 = sshll.u32 %s1131_s15, 4  ;;  %s960_s17 = scalar_lea.vmem %s221_s11, 512  ;;  %s253_s16 = int_to_ptr.vmem [resolvable:$true] %s252_s16 }
  0x16   : > { %p1227_p11 = pnand %p884_p9, %p1424_p1  ;;  %p961_p13 = scmp.ne.s32.totalorder %s221_s11, %s960_s17 }
  0x17   : > { %p968_p5 = scmp.lt.s32.totalorder %s221_s11, %s221_s11  ;;  %p969_p7 = scmp.lt.s32.totalorder %s960_s17, %s960_s17 }
  0x18   : > { %p951_p12 = pneg %p1227_p11 }
  0x19   : > { %p970_p9 = por %p969_p7, %p968_p5 }
  0x1a   : > { %p963_p0 = pnand %p961_p13, %p951_p12 }
  0x1c   : > { %p964_p3 = pneg %p963_p0 }
  0x1e   : > { %p971_p10 = pnand %p970_p9, %p964_p3 }
  0x20   : > { %974 = shalt.err (!%p971_p10)
}
  0x21   : > { %s1132_s18 = smov 128   ;;  %s1133_s19 = smov 8  }
  0x22   : > { %s1434_s1 = sld [smem:[#allocation15_spill]]  ;;  %s986_s22 = scalar_lea.vmem %s237_s14, 2048 }
  0x23   : > { %p987_p1 = scmp.ne.s32.totalorder %s237_s14, %s986_s22  ;;  %p994_p2 = scmp.lt.s32.totalorder %s237_s14, %s237_s14 }
  0x24   : > { %p995_p6 = scmp.lt.s32.totalorder %s986_s22, %s986_s22 }
  0x25   : > { %p989_p13 = pnand %p987_p1, %p951_p12 }
  0x26   : > { %p996_p5 = por %p995_p6, %p994_p2 }
  0x27   : > { %p990_p0 = pneg %p989_p13 }
  0x28   : > { %887 = dma.hbm_to_vmem [thread:$0]  (!%p1227_p11), %s1434_s1, 512, %s221_s11, [#allocation6], %s1132_s18, %s1132_s18, %s1133_s19  }
  0x29   : > { %p997_p3 = pnand %p996_p5, %p990_p0 }
  0x2b   : > { %1000 = shalt.err (!%p997_p3)
}
  0x2c   : > { %s1435_s3 = sld [smem:[#allocation16_spill]]  ;;  %s1012_s10 = scalar_lea.vmem %s253_s16, 2048 }
  0x2d   : > { %p1013_p10 = scmp.ne.s32.totalorder %s253_s16, %s1012_s10  ;;  %p1020_p9 = scmp.lt.s32.totalorder %s253_s16, %s253_s16 }
  0x2e   : > { %p1021_p13 = scmp.lt.s32.totalorder %s1012_s10, %s1012_s10 }
  0x2f   : > { %p1015_p7 = pnand %p1013_p10, %p951_p12 }
  0x30   : > { %p1022_p4 = por %p1021_p13, %p1020_p9 }
  0x31   : > { %p1016_p1 = pneg %p1015_p7 }
  0x32   : > { %890 = dma.hbm_to_vmem [thread:$0]  (!%p1227_p11), %s1435_s3, 2048, %s237_s14, [#allocation6], %s1132_s18, %s1132_s18, %s1133_s19  }
  0x33   : > { %p1023_p2 = pnand %p1022_p4, %p1016_p1 }
  0x35   : > { %1026 = shalt.err (!%p1023_p2)
}
  0x36   : > { %893 = dma.hbm_to_vmem [thread:$0]  (!%p1227_p11), %s1421_s5, 2048, %s253_s16, [#allocation9], %s1132_s18, %s1132_s18, %s1133_s19  }
  0x37   : > { %s1258_s14 = sadd.s32 1, %s1127_s27   ;;  %s32_s12 = sadd.s32 1, %s1123_s26 }
  0x38   : > { %s29_s15 = ssub.s32 %s1127_s27, %s1258_s14  ;;  %p39_p6 = scmp.ne.s32.totalorder %s1123_s26, %s1119_s25 }
  0x39   : > { %p30_p4 = scmp.eq.s32.totalorder %s29_s15, 0  ;;  %p40_p12 = scmp.eq.s32.totalorder %s1127_s27, 0 }
  0x3a   : > { %p905_p0 = scmp.lt.s32.totalorder %s1127_s27, 2  ;;  %p1436_p3 = scmp.eq.s32.totalorder %s1199_s28, 1 }
  0x3b   : > { %s1268_s17 = scalar_select %p30_p4, %s1123_s26, %s32_s12  }
  0x3c   : > { %p41_p5 = por %p40_p12, %p39_p6  ;;  %p1272_p10 = por %p1436_p3, %p39_p6 }
  0x3d   : > { %s269_s21 = sand.u32 1, %s1123_s26   ;;  %s733_s22 = sshll.u32 %s1127_s27, 7 }
  0x3e   : > { %s1437_s20 = scalar_select %p1272_p10, 1, 0 }
  0x3f   : > { %s732_s16 = sshll.u32 %s269_s21, 3  ;;  %s1281_s23 = scalar_lea.hbm %s1416_s0, %s733_s22 }
  0x40   : > { %s273_s29 = scalar_lea.vmem [#allocation2], %s732_s16  ;;  %p1283_p11 = pnand %p905_p0, %p41_p5 }
  0x41   : > { %s280_s10 = sshll.u32 %s273_s29, 4  ;;  %s270_s13 = scalar_lea.sflag [#allocation3], %s269_s21  ;;  %s281_s10 = int_to_ptr.vmem [resolvable:$true] %s280_s10 }
  0x42   : > { %s1027_s15 = scalar_lea.hbm %s1281_s23, 128  ;;  %p1029_p1 = pneg %p1283_p11 }
  0x43   : > { %p1028_p7 = scmp.ne.s32.totalorder %s1281_s23, %s1027_s15  ;;  %s1032_s18 = scalar_lea.hbm %s1416_s0, 256 }
  0x44   : > { %p1033_p2 = scmp.lt.s32.totalorder %s1281_s23, %s1416_s0  ;;  %p1034_p4 = scmp.lt.s32.totalorder %s1032_s18, %s1027_s15 }
  0x45   : > { %p1030_p9 = pnand %p1029_p1, %p1028_p7 }
  0x46   : > { %p1035_p6 = por %p1034_p4, %p1033_p2 }
  0x47   : > { %p1031_p13 = pneg %p1030_p9 }
  0x49   : > { %p1036_p12 = pnand %p1035_p6, %p1031_p13 }
  0x4b   : > { %1039 = shalt.err (!%p1036_p12)
}
  0x4c   : > { %s1040_s29 = scalar_lea.vmem %s281_s10, 128  ;;  %s1134_s21 = smov [#allocation2]  }
  0x4d   : > { %p1041_p0 = scmp.ne.s32.totalorder %s281_s10, %s1040_s29  ;;  %s1045_s1 = sshll.u32 %s1134_s21, 4  ;;  %s1046_s1 = int_to_ptr.vmem [resolvable:$false] %s1045_s1 }
  0x4e   : > { %s1047_s3 = scalar_lea.vmem %s1046_s1, 256  ;;  %p1048_p7 = scmp.lt.s32.totalorder %s281_s10, %s1046_s1 }
  0x4f   : > { %p1043_p5 = pnand %p1041_p0, %p1029_p1  ;;  %p1049_p9 = scmp.lt.s32.totalorder %s1047_s3, %s1040_s29 }
  0x51   : > { %p1044_p3 = pneg %p1043_p5  ;;  %p1050_p10 = por %p1049_p9, %p1048_p7 }
  0x53   : > { %p1051_p8 = pnand %p1050_p10, %p1044_p3 }
  0x55   : > { %1054 = shalt.err (!%p1051_p8)
}
  0x56   : > { %897 = dma.hbm_to_vmem [thread:$0]  (!%p1283_p11), %s1281_s23, 128, %s281_s10, %s270_s13  }
  0x57   : > { %p1439_p13 = scmp.ne.s32.totalorder %s1432_s9, 0 }
  0x58   : > { %s1304_s15 = sand.u32 (!%p1439_p13), 1, %s1119_s25   ;;  %p1440_p10 = scmp.ne.s32.totalorder (!%p1439_p13), %s1430_s30, 0 }
  0x59   : > { %289 = sbr.rel (%p1439_p13) target bundleno = 713 (0x2c9), region = 48  ;;  %s735_s12 = sshll.u32 (!%p1439_p13), %s1304_s15, 3 }
  0x5a   : > { %s292_s1 = scalar_lea.sflag (!%p1439_p13), [#allocation3], %s1304_s15  ;;  %s295_s3 = scalar_lea.vmem (!%p1439_p13), [#allocation2], %s735_s12 }
  0x5e   : > { %1098 = dma.done.wait (%p1440_p10), %s292_s1, 128  }
  0x5f   : > { %1100 = vsyncadd (%p1440_p10), %s292_s1, 4294967168  ;;  %p1441_p8 = scmp.eq.s32.totalorder %s1199_s28, 0 }
  0x61   : > { %1102 = dma.done.wait (%p1441_p8), [#allocation6], 2560   ;;  %p1442_p11 = pmov %p1441_p8 }
  0x62   : > { %p1443_p1 = pmov %p1441_p8 }
  0x63   : > { %1104 = vsyncadd (%p1442_p11), [#allocation6], 4294964736 }
  0x64   : > { %1106 = dma.done.wait (%p1443_p1), [#allocation9], 2048   ;;  %p1444_p2 = pmov %p1443_p1 }
  0x65   : > { %v1135_v0 = vmov 0.0   ;;  %vm1136_vm0 = vmmov 0   ;;  %v342_v1 = vld [vmem:[#allocation5 + $0x18] sm:$0xff]  ;;  %v341_v2 = vld [vmem:[#allocation5 + $0x10] sm:$0xff]  ;;  %v340_v4 = vld [vmem:[#allocation5 + $0x8] sm:$0xff]  ;;  %vm350_vm1 = vcmask 261120  }
  0x66   : > { %1108 = vsyncadd (%p1444_p2), [#allocation9], 4294965248  ;;  %787 = vmatprep.subr.mxu0 %v1135_v0  ;;  %795 = vmatprep.mubr.msk.f32.mxu0 %vm1136_vm0, %v1135_v0  ;;  %v440_v3 = vld [vmem:[#allocation7 + $0x78] sm:$0xff]  ;;  %v439_v5 = vld [vmem:[#allocation7 + $0x70] sm:$0xff]  ;;  %s745_s22 = sshll.u32 %s1199_s28, 7  ;;  %s337_s18 = scalar_lea.vmem [#allocation10], %s735_s12 }
  0x67   : > { %798 = vmatprep.subr.mxu1 %v1135_v0  ;;  %830 = vmatprep.mubr.msk.f32.mxu1 %vm1136_vm0, %v1135_v0  ;;  %v438_v6 = vld [vmem:[#allocation7 + $0x68] sm:$0xff]  ;;  %v339_v7 = vld [vmem:[#allocation5] sm:$0xff]  ;;  %v338_v8 = vld [vmem:[%s295_s3] sm:$0xff]  ;;  %s627_s19 = sshll.u32 %s337_s18, 4  ;;  %s1379_s21 = scalar_lea.hbm %s1423_s7, %s745_s22  ;;  %s628_s19 = int_to_ptr.vmem [resolvable:$true] %s627_s19 }
  0x68   : > { %788 = vmatpush3.msra.mxu0 %v342_v1  ;;  %799 = vmatpush3.msra.mxu1 %v440_v3  ;;  %v437_v9 = vld [vmem:[#allocation7 + $0x60] sm:$0xff]  ;;  %v436_v10 = vld [vmem:[#allocation7 + $0x58] sm:$0xff]  ;;  %v435_v11 = vld [vmem:[#allocation7 + $0x50] sm:$0xff]  ;;  %s614_s1 = scalar_lea.sflag [#allocation4], %s1304_s15  ;;  %s1055_s3 = scalar_lea.vmem %s628_s19, 128 }
  0x69   : > { %789 = vmatprep.subr.mxu0 %v1135_v0  ;;  %800 = vmatprep.subr.mxu1 %v1135_v0  ;;  %v434_v12 = vld [vmem:[#allocation7 + $0x48] sm:$0xff]  ;;  %v433_v13 = vld [vmem:[#allocation7 + $0x40] sm:$0xff]  ;;  %v432_v14 = vld [vmem:[#allocation7 + $0x38] sm:$0xff]  ;;  %p1056_p4 = scmp.ne.s32.totalorder %s628_s19, %s1055_s3  ;;  %p1445_p6 = scmp.ne.s32.totalorder %s1437_s20, 0 }
  0x6a   : > { %790 = vmatpush3.msra.mxu0 %v341_v2  ;;  %801 = vmatpush3.msra.mxu1 %v439_v5  ;;  %v431_v15 = vld [vmem:[#allocation7 + $0x30] sm:$0xff]  ;;  %v430_v16 = vld [vmem:[#allocation7 + $0x28] sm:$0xff]  ;;  %v429_v17 = vld [vmem:[#allocation7 + $0x20] sm:$0xff]  ;;  %s1137_s28 = smov [#allocation10]  }
  0x6b   : > { %791 = vmatprep.subr.mxu0 %v1135_v0  ;;  %802 = vmatprep.subr.mxu1 %v1135_v0  ;;  %v428_v18 = vld [vmem:[#allocation7 + $0x18] sm:$0xff]  ;;  %v427_v19 = vld [vmem:[#allocation7 + $0x10] sm:$0xff]  ;;  %v426_v20 = vld [vmem:[#allocation7 + $0x8] sm:$0xff]  ;;  %p1057_p12 = pnand %p1056_p4, %p1445_p6  ;;  %s1059_s30 = sshll.u32 %s1137_s28, 4  ;;  %s1060_s30 = int_to_ptr.vmem [resolvable:$false] %s1059_s30 }
  0x6c   : > { %792 = vmatpush3.msra.mxu0 %v340_v4  ;;  %803 = vmatpush3.msra.mxu1 %v438_v6  ;;  %v425_v21 = vld [vmem:[#allocation7] sm:$0xff]  ;;  %v534_v22 = vld [vmem:[#allocation8 + $0x78] sm:$0xff]  ;;  %v533_v23 = vld [vmem:[#allocation8 + $0x70] sm:$0xff]  ;;  %s1061_s12 = scalar_lea.vmem %s1060_s30, 256  ;;  %p1062_p5 = scmp.lt.s32.totalorder %s628_s19, %s1060_s30 }
  0x6d   : > { %793 = vmatprep.subr.mxu0 %v1135_v0  ;;  %804 = vmatprep.subr.mxu1 %v1135_v0  ;;  %v532_v24 = vld [vmem:[#allocation8 + $0x68] sm:$0xff]  ;;  %v531_v25 = vld [vmem:[#allocation8 + $0x60] sm:$0xff]  ;;  %v530_v26 = vld [vmem:[#allocation8 + $0x58] sm:$0xff]  ;;  %p1058_p0 = pneg %p1057_p12  ;;  %p1063_p3 = scmp.lt.s32.totalorder %s1061_s12, %s1055_s3 }
  0x6e   : > { %794 = vmatpush3.msra.mxu0 %v339_v7  ;;  %805 = vmatpush3.msra.mxu1 %v437_v9  ;;  %v529_v27 = vld [vmem:[#allocation8 + $0x50] sm:$0xff]  ;;  %v528_v28 = vld [vmem:[#allocation8 + $0x48] sm:$0xff]  ;;  %v527_v29 = vld [vmem:[#allocation8 + $0x40] sm:$0xff] }
  0x6f   : > { %796 = vmatmul.mubr.msk.f32.vlgmr.msra.gmra.mxu0 %vm350_vm1, %v338_v8  ;;  %806 = vmatprep.subr.mxu1 %v1135_v0  ;;  %v526_v30 = vld [vmem:[#allocation8 + $0x38] sm:$0xff]  ;;  %v525_v31 = vld [vmem:[#allocation8 + $0x30] sm:$0xff]  ;;  %v524_v32 = vld [vmem:[#allocation8 + $0x28] sm:$0xff]  ;;  %p1064_p7 = por %p1063_p3, %p1062_p5 }
  0x70   : > { %833 = vmatprep.subr.mxu0 %v1135_v0  ;;  %807 = vmatpush3.msra.mxu1 %v436_v10  ;;  %v523_v33 = vld [vmem:[#allocation8 + $0x20] sm:$0xff]  ;;  %v522_v34 = vld [vmem:[#allocation8 + $0x18] sm:$0xff]  ;;  %v740_v35 = vld [vmem:[%s1418_s2] ss:$0 sm:$0xff] }
  0x71   : > { %865 = vmatprep.mubr.msk.f32.mxu0 %vm1136_vm0, %v1135_v0  ;;  %808 = vmatprep.subr.mxu1 %v1135_v0  ;;  %v521_v40 = vld [vmem:[#allocation8 + $0x10] sm:$0xff]  ;;  %v520_v41 = vld [vmem:[#allocation8 + $0x8] sm:$0xff]  ;;  %v519_v42 = vld [vmem:[#allocation8] sm:$0xff]  ;;  %p1065_p9 = pnand %p1064_p7, %p1058_p0 }
  0x72   : > { %809 = vmatpush3.msra.mxu1 %v435_v11  ;;  %834 = vmatpush3.msra.mxu0 %v534_v22  ;;  %v742_v43 = vld [vmem:[%s1420_s4] ss:$0 sm:$0xff] }
  0x73   : > { %810 = vmatprep.subr.mxu1 %v1135_v0  ;;  %835 = vmatprep.subr.mxu0 %v1135_v0  ;;  %v743_v48 = vld [vmem:[%s1422_s6] ss:$0 sm:$0xff] }
  0x74   : > { %811 = vmatpush3.msra.mxu1 %v434_v12  ;;  %836 = vmatpush3.msra.mxu0 %v533_v23 }
  0x75   : > { %812 = vmatprep.subr.mxu1 %v1135_v0  ;;  %837 = vmatprep.subr.mxu0 %v1135_v0 }
  0x76   : > { %813 = vmatpush3.msra.mxu1 %v433_v13  ;;  %838 = vmatpush3.msra.mxu0 %v532_v24 }
  0x77   : > { %814 = vmatprep.subr.mxu1 %v1135_v0  ;;  %839 = vmatprep.subr.mxu0 %v1135_v0 }
  0x78   : > { %815 = vmatpush3.msra.mxu1 %v432_v14  ;;  %840 = vmatpush3.msra.mxu0 %v531_v25 }
  0x79   : > { %816 = vmatprep.subr.mxu1 %v1135_v0  ;;  %841 = vmatprep.subr.mxu0 %v1135_v0 }
  0x7a   : > { %817 = vmatpush3.msra.mxu1 %v431_v15  ;;  %842 = vmatpush3.msra.mxu0 %v530_v26 }
  0x7b   : > { %818 = vmatprep.subr.mxu1 %v1135_v0  ;;  %843 = vmatprep.subr.mxu0 %v1135_v0 }
  0x7c   : > { %819 = vmatpush3.msra.mxu1 %v430_v16  ;;  %844 = vmatpush3.msra.mxu0 %v529_v27 }
  0x7d   : > { %820 = vmatprep.subr.mxu1 %v1135_v0  ;;  %845 = vmatprep.subr.mxu0 %v1135_v0 }
  0x7e   : > { %821 = vmatpush3.msra.mxu1 %v429_v17  ;;  %846 = vmatpush3.msra.mxu0 %v528_v28 }
  0x7f   : > { %822 = vmatprep.subr.mxu1 %v1135_v0  ;;  %847 = vmatprep.subr.mxu0 %v1135_v0 }
  0x80   : > { %823 = vmatpush3.msra.mxu1 %v428_v18  ;;  %848 = vmatpush3.msra.mxu0 %v527_v29 }
  0x81   : > { %824 = vmatprep.subr.mxu1 %v1135_v0  ;;  %849 = vmatprep.subr.mxu0 %v1135_v0 }
  0x82   : > { %825 = vmatpush3.msra.mxu1 %v427_v19  ;;  %850 = vmatpush3.msra.mxu0 %v526_v30 }
  0x83   : > { %826 = vmatprep.subr.mxu1 %v1135_v0  ;;  %851 = vmatprep.subr.mxu0 %v1135_v0 }
  0x84   : > { %827 = vmatpush3.msra.mxu1 %v426_v20  ;;  %852 = vmatpush3.msra.mxu0 %v525_v31 }
  0x85   : > { %828 = vmatprep.subr.mxu1 %v1135_v0  ;;  %853 = vmatprep.subr.mxu0 %v1135_v0 }
  0x86   : > { %829 = vmatpush3.msra.mxu1 %v425_v21  ;;  %854 = vmatpush3.msra.mxu0 %v524_v32 }
  0x87   : > { %855 = vmatprep.subr.mxu0 %v1135_v0 }
  0x88   : > { %856 = vmatpush3.msra.mxu0 %v523_v33 }
  0x89   : > { %857 = vmatprep.subr.mxu0 %v1135_v0 }
  0x8a   : > { %858 = vmatpush3.msra.mxu0 %v522_v34 }
  0x8b   : > { %859 = vmatprep.subr.mxu0 %v1135_v0 }
  0x8c   : > { %860 = vmatpush3.msra.mxu0 %v521_v40 }
  0x8d   : > { %861 = vmatprep.subr.mxu0 %v1135_v0 }
  0x8e   : > { %862 = vmatpush3.msra.mxu0 %v520_v41 }
  0x8f   : > { %863 = vmatprep.subr.mxu0 %v1135_v0 }
  0x90   : > { %864 = vmatpush3.msra.mxu0 %v519_v42 }
 0x12f   : > { %v420_v36 = vpop.f32.mrf.mxu0 }
 0x130   : > { %v421_v37 = vadd.f32 %v740_v35, %v420_v36 }
 0x131   : > { %v797_v38 = vpop.f32.mrf.mxu0 }
 0x132   : > { %v424_v39 = vmax.f32 %v421_v37, 0.0 }
 0x134   : > { %831 = vmatmul.mubr.f32.vlgmr.msra.gmra.mxu1 %v424_v39 }
 0x1f4   : > { %v514_v44 = vpop.f32.mrf.mxu1 }
 0x1f5   : > { %v515_v45 = vadd.f32 %v742_v43, %v514_v44 }
 0x1f6   : > { %v832_v46 = vpop.f32.mrf.mxu1 }
 0x1f7   : > { %v518_v47 = vmax.f32 %v515_v45, 0.0 }
 0x1f9   : > { %866 = vmatmul.mubr.f32.vlgmr.msra.gmra.mxu0 %v518_v47 }
 0x2b9   : > { %v608_v49 = vpop.f32.mrf.mxu0 }
 0x2ba   : > { %v609_v50 = vadd.f32 %v743_v48, %v608_v49 }
 0x2bb   : > { %v867_v51 = vpop.f32.mrf.mxu0 }
 0x2bc   : > { %612 = vst [vmem:[%s337_s18] sm:$0xff] %v609_v50 }
 0x2bd   : > { %1068 = shalt.err (!%p1065_p9)
}
 0x2be   : > { %s1069_s9 = scalar_lea.hbm %s1379_s21, 128  ;;  %s1073_s10 = scalar_lea.hbm %s1423_s7, 256 }
 0x2bf   : > { %p1070_p13 = scmp.ne.s32.totalorder %s1379_s21, %s1069_s9  ;;  %p1074_p11 = scmp.lt.s32.totalorder %s1379_s21, %s1423_s7 }
 0x2c0   : > { %p1075_p1 = scmp.lt.s32.totalorder %s1073_s10, %s1069_s9 }
 0x2c1   : > { %p1071_p10 = pnand %p1070_p13, %p1445_p6 }
 0x2c2   : > { %p1076_p2 = por %p1075_p1, %p1074_p11 }
 0x2c3   : > { %p1072_p8 = pneg %p1071_p10 }
 0x2c5   : > { %p1077_p4 = pnand %p1076_p2, %p1072_p8 }
 0x2c7   : > { %1080 = shalt.err (!%p1077_p4)
}
 0x2c8   : > { %882 = dma.vmem_to_hbm [thread:$0]  (%p1445_p6), %s628_s19, 128, %s1379_s21, %s614_s1  }
 0x2c9 PF: > { %s639_s22 = sand.u32 1, %s1115_s24   ;;  %p1446_p12 = scmp.ne.s32.totalorder %s1431_s8, 0 }
 0x2ca   : > { %p1447_p0 = scmp.ge.s32.totalorder %s1127_s27, 2  ;;  %s640_s18 = scalar_lea.sflag [#allocation4], %s639_s22 }
 0x2cc   : > { %p899_p5 = pnand %p1447_p0, %p1446_p12 }
 0x2ce   : > { %p900_p3 = pneg %p899_p5 }
 0x2d0   : > { %1110 = dma.done.wait (%p900_p3), %s640_s18, 128  }
 0x2d1   : > { %1112 = vsyncadd (%p900_p3), %s640_s18, 4294967168  ;;  %p22_p7 = scmp.ge.s32.totalorder %s1258_s14, 4   ;;  %s1448_s24 = smov %s1119_s25 }
 0x2d2   : > { %s1449_s25 = smov %s1123_s26  ;;  %s1450_s26 = smov %s1268_s17 }
 0x2d3   : > { %s1451_s27 = smov %s1258_s14  ;;  %24 = sbr.rel (!%p22_p7) target bundleno = 10 (0xa), region = 105 }
 0x2d8   :  { %645 = vsyncpa [#allocation3], 1 }
 0x2d9   :  { %647 = vsyncpa [#allocation3 + $0x1], 1 }
 0x2da   :  { %648 = vsyncpa [#allocation6], 1 }
 0x2db   :  { %649 = vsyncpa [#allocation9], 1 }
 0x2dc   :  { %650 = vsyncpa [#allocation4], 1 }
 0x2dd   :  { %652 = vsyncpa [#allocation4 + $0x1], 1 }

</bundles_post_ra>
